<compile_context>
chip_gen: v6e
topology: v6e:2x2x1
jax: 0.10.0
libtpu: 0.0.40
codegen_flags: <defaults>
</compile_context>

<pallas_src>
import jax
import jax.numpy as jnp
from jax.experimental import pallas as pl
from jax.experimental.pallas import tpu as pltpu

CLIP_VAL = 1e-8  # DurationPredictorLoss clip_val (per the PyTorch spec)


def _round_up(x, m):
    return ((x + m - 1) // m) * m


def _fs2_loss_kernel(d_outs_ref, ds_ref, p_outs_ref, ps_ref, e_outs_ref, es_ref,
                     ilens_ref, out_ref, acc_d, acc_p, acc_e):
    B, TT = d_outs_ref.shape
    t = pl.program_id(0)
    nt = pl.num_programs(0)

    @pl.when(t == 0)
    def _init():
        acc_d[...] = jnp.zeros_like(acc_d)
        acc_p[...] = jnp.zeros_like(acc_p)
        acc_e[...] = jnp.zeros_like(acc_e)

    # non-pad mask for this T-tile: True where (global t index) < ilens[b]
    t_idx = jax.lax.broadcasted_iota(jnp.int32, (B, TT), 1) + t * TT
    mask = (t_idx < ilens_ref[...]).astype(jnp.float32)          # (B, TT)

    # --- duration loss: MSE in log domain (DurationPredictorLoss) ---
    # ds is int32 in linear domain; cast + log in-kernel (EUP slot is idle).
    log_ds = jnp.log(ds_ref[...].astype(jnp.float32) + CLIP_VAL)
    dd = d_outs_ref[...].astype(jnp.float32) - log_ds
    acc_d[...] += dd * dd * mask

    # --- SmoothL1 (beta = 1.0) for pitch / energy ---
    def smooth_l1_accumulate(pred_ref, tgt_ref, acc):
        d = pred_ref[...].astype(jnp.float32) - tgt_ref[...].astype(jnp.float32)
        ad = jnp.abs(d)
        l = jnp.where(ad < 1.0, 0.5 * d * d, ad - 0.5)
        acc[...] += l * mask

    smooth_l1_accumulate(p_outs_ref, ps_ref, acc_p)
    smooth_l1_accumulate(e_outs_ref, es_ref, acc_e)

    @pl.when(t == nt - 1)
    def _finalize():
        # exact integer count of valid tokens from ilens (B scalars)
        count = jnp.sum(ilens_ref[...]).astype(jnp.float32)
        inv_count = 1.0 / count
        out_ref[0] = jnp.sum(acc_d[...]) * inv_count
        out_ref[1] = jnp.sum(acc_p[...]) * inv_count
        out_ref[2] = jnp.sum(acc_e[...]) * inv_count


def fastspeech2_loss(d_outs, p_outs, e_outs, ds, ps, es, ilens, *, max_tile_t=512):
    """d_outs: (B,T) log-duration predictions; ds: (B,T) int durations (linear);
    p_outs/ps/e_outs/es: (B,T,1) pitch/energy pred+target; ilens: (B,) lengths.
    Returns (duration_loss, pitch_loss, energy_loss) scalars (masked means)."""
    B, T = d_outs.shape

    # lane-dense tiling: TILE_T multiple of 128, T padded up to a tile multiple
    tile_t = min(max_tile_t, _round_up(T, 128))
    t_pad = _round_up(T, tile_t)
    nt = t_pad // tile_t

    def prep(x):
        x = x.reshape(B, T)                       # free reshape (squeeze last 1)
        if t_pad != T:
            x = jnp.pad(x, ((0, 0), (0, t_pad - T)))
        return x                                  # native dtype; cast in-kernel

    d2 = prep(d_outs)
    ds2 = prep(ds)                                # stays int32
    p2 = prep(p_outs)
    ps2 = prep(ps)
    e2 = prep(e_outs)
    es2 = prep(es)
    ilens2 = ilens.astype(jnp.int32).reshape(B, 1)

    def tspec():
        return pl.BlockSpec((B, tile_t), lambda t: (0, t))

    out = pl.pallas_call(
        _fs2_loss_kernel,
        out_shape=jax.ShapeDtypeStruct((3,), jnp.float32),
        grid_spec=pltpu.PrefetchScalarGridSpec(
            num_scalar_prefetch=0,
            grid=(nt,),
            in_specs=[tspec(), tspec(), tspec(), tspec(), tspec(), tspec(),
                      pl.BlockSpec((B, 1), lambda t: (0, 0))],
            out_specs=pl.BlockSpec(memory_space=pltpu.SMEM),
            scratch_shapes=[pltpu.VMEM((B, tile_t), jnp.float32),
                            pltpu.VMEM((B, tile_t), jnp.float32),
                            pltpu.VMEM((B, tile_t), jnp.float32)],
        ),
        compiler_params=pltpu.CompilerParams(
            dimension_semantics=("arbitrary",),
            vmem_limit_bytes=64 * 1024 * 1024,
        ),
    )(d2, ds2, p2, ps2, e2, es2, ilens2)
    return out[0], out[1], out[2]


def _reference(d_outs, p_outs, e_outs, ds, ps, es, ilens):
    B, T = d_outs.shape
    mask = jnp.arange(T)[None, :] < ilens[:, None]
    cnt = jnp.sum(ilens).astype(jnp.float32)

    log_ds = jnp.log(ds.astype(jnp.float32) + CLIP_VAL)
    dd = d_outs - log_ds
    dur = jnp.sum(jnp.where(mask, dd * dd, 0.0)) / cnt

    def sl1(pred, tgt):
        d = pred.reshape(B, T) - tgt.reshape(B, T)
        ad = jnp.abs(d)
        l = jnp.where(ad < 1.0, 0.5 * d * d, ad - 0.5)
        return jnp.sum(jnp.where(mask, l, 0.0)) / cnt

    return dur, sl1(p_outs, ps), sl1(e_outs, es)


if __name__ == "__main__":
    key = jax.random.PRNGKey(0)
    B, T = 2, 8
    k1, k2, k3, k4, k5, k6 = jax.random.split(key, 6)

    d_outs = jax.random.normal(k1, (B, T), dtype=jnp.float32)      # log-domain predictions
    ds = jax.random.randint(k2, (B, T), 1, 6, dtype=jnp.int32)     # linear-domain durations
    p_outs = jax.random.normal(k3, (B, T, 1), dtype=jnp.float32)
    ps = jax.random.normal(k4, (B, T, 1), dtype=jnp.float32)
    e_outs = jax.random.normal(k5, (B, T, 1), dtype=jnp.float32)
    es = jax.random.normal(k6, (B, T, 1), dtype=jnp.float32)
    ilens = jnp.array([T, 5], dtype=jnp.int32)

    dur_l, pitch_l, energy_l = fastspeech2_loss(d_outs, p_outs, e_outs, ds, ps, es, ilens)
    jax.block_until_ready((dur_l, pitch_l, energy_l))

    r_dur, r_pitch, r_energy = _reference(d_outs, p_outs, e_outs, ds, ps, es, ilens)
    assert jnp.allclose(dur_l, r_dur, rtol=1e-5, atol=1e-5)
    assert jnp.allclose(pitch_l, r_pitch, rtol=1e-5, atol=1e-5)
    assert jnp.allclose(energy_l, r_energy, rtol=1e-5, atol=1e-5)

    print("KERNEL_OK")
</pallas_src>

<mosaic_0001>
module attributes {stable_mosaic.version = 11 : i64} {
  func.func @_fs2_loss_kernel(%arg0: i32, %arg1: memref<2x128xf32, #tpu.memory_space<vmem>>, %arg2: memref<2x128xi32, #tpu.memory_space<vmem>>, %arg3: memref<2x128xf32, #tpu.memory_space<vmem>>, %arg4: memref<2x128xf32, #tpu.memory_space<vmem>>, %arg5: memref<2x128xf32, #tpu.memory_space<vmem>>, %arg6: memref<2x128xf32, #tpu.memory_space<vmem>>, %arg7: memref<2x1xi32, #tpu.memory_space<vmem>>, %arg8: memref<3xf32, #tpu.memory_space<smem>>, %arg9: memref<2x128xf32, #tpu.memory_space<vmem>>, %arg10: memref<2x128xf32, #tpu.memory_space<vmem>>, %arg11: memref<2x128xf32, #tpu.memory_space<vmem>>) attributes {dimension_semantics = [#tpu.dimension_semantics<arbitrary>], iteration_bounds = array<i64: 1>, scalar_prefetch = 0 : i64, scratch_operands = 3 : i64, tpu.core_type = #tpu.core_type<tc>, window_params = [{transform_indices = @transform_0, window_bounds = array<i64: 2, 128>}, {transform_indices = @transform_1, window_bounds = array<i64: 2, 128>}, {transform_indices = @transform_2, window_bounds = array<i64: 2, 128>}, {transform_indices = @transform_3, window_bounds = array<i64: 2, 128>}, {transform_indices = @transform_4, window_bounds = array<i64: 2, 128>}, {transform_indices = @transform_5, window_bounds = array<i64: 2, 128>}, {pipeline_mode = #tpu.pipeline_mode<synchronous>, transform_indices = @transform_6, window_bounds = array<i64: 2, 1>}, {transform_indices = @transform_7, window_bounds = array<i64: 3>}]} {
    %c0_i32 = arith.constant 0 : i32
    %0 = arith.cmpi eq, %arg0, %c0_i32 : i32
    %1 = arith.extui %0 : i1 to i32
    %c0_i32_0 = arith.constant 0 : i32
    %2 = arith.cmpi ne, %1, %c0_i32_0 : i32
    scf.if %2 {
      %cst_34 = arith.constant 0.000000e+00 : f32
      %59 = vector.broadcast %cst_34 : f32 to vector<2x128xf32>
      %c0_35 = arith.constant 0 : index
      %c0_36 = arith.constant 0 : index
      %60 = vector.load %arg9[%c0_35, %c0_36] : memref<2x128xf32, #tpu.memory_space<vmem>>, vector<2x128xf32>
      tpu.vector_store %arg9[%c0_35, %c0_36], %59 {strides = array<i32>} : memref<2x128xf32, #tpu.memory_space<vmem>>, vector<2x128xf32>,
      %cst_37 = arith.constant 0.000000e+00 : f32
      %61 = vector.broadcast %cst_37 : f32 to vector<2x128xf32>
      %c0_38 = arith.constant 0 : index
      %c0_39 = arith.constant 0 : index
      %62 = vector.load %arg10[%c0_38, %c0_39] : memref<2x128xf32, #tpu.memory_space<vmem>>, vector<2x128xf32>
      tpu.vector_store %arg10[%c0_38, %c0_39], %61 {strides = array<i32>} : memref<2x128xf32, #tpu.memory_space<vmem>>, vector<2x128xf32>,
      %cst_40 = arith.constant 0.000000e+00 : f32
      %63 = vector.broadcast %cst_40 : f32 to vector<2x128xf32>
      %c0_41 = arith.constant 0 : index
      %c0_42 = arith.constant 0 : index
      %64 = vector.load %arg11[%c0_41, %c0_42] : memref<2x128xf32, #tpu.memory_space<vmem>>, vector<2x128xf32>
      tpu.vector_store %arg11[%c0_41, %c0_42], %63 {strides = array<i32>} : memref<2x128xf32, #tpu.memory_space<vmem>>, vector<2x128xf32>,
    } else {
    }
    %3 = tpu.iota {dimensions = array<i32: 1>} : vector<2x128xi32>
    %c128_i32 = arith.constant 128 : i32
    %4 = arith.muli %arg0, %c128_i32 : i32
    %5 = vector.broadcast %4 : i32 to vector<2x128xi32>
    %6 = arith.addi %3, %5 : vector<2x128xi32>
    %c0 = arith.constant 0 : index
    %c0_1 = arith.constant 0 : index
    %7 = vector.load %arg7[%c0, %c0_1] : memref<2x1xi32, #tpu.memory_space<vmem>>, vector<2x1xi32>
    %8 = vector.broadcast %7 : vector<2x1xi32> to vector<2x128xi32>
    %9 = arith.cmpi slt, %6, %8 : vector<2x128xi32>
    %10 = arith.extui %9 : vector<2x128xi1> to vector<2x128xi32>
    %11 = arith.sitofp %10 : vector<2x128xi32> to vector<2x128xf32>
    %c0_2 = arith.constant 0 : index
    %c0_3 = arith.constant 0 : index
    %12 = vector.load %arg2[%c0_2, %c0_3] : memref<2x128xi32, #tpu.memory_space<vmem>>, vector<2x128xi32>
    %13 = arith.sitofp %12 : vector<2x128xi32> to vector<2x128xf32>
    %cst = arith.constant 9.99999993E-9 : f32
    %14 = vector.broadcast %cst : f32 to vector<2x128xf32>
    %15 = arith.addf %13, %14 : vector<2x128xf32>
    %16 = math.log %15 : vector<2x128xf32>
    %c0_4 = arith.constant 0 : index
    %c0_5 = arith.constant 0 : index
    %17 = vector.load %arg1[%c0_4, %c0_5] : memref<2x128xf32, #tpu.memory_space<vmem>>, vector<2x128xf32>
    %18 = arith.subf %17, %16 : vector<2x128xf32>
    %c0_6 = arith.constant 0 : index
    %c0_7 = arith.constant 0 : index
    %19 = vector.load %arg9[%c0_6, %c0_7] : memref<2x128xf32, #tpu.memory_space<vmem>>, vector<2x128xf32>
    %20 = arith.mulf %18, %18 : vector<2x128xf32>
    %21 = arith.mulf %20, %11 : vector<2x128xf32>
    %22 = arith.addf %19, %21 : vector<2x128xf32>
    %c0_8 = arith.constant 0 : index
    %c0_9 = arith.constant 0 : index
    %23 = vector.load %arg9[%c0_8, %c0_9] : memref<2x128xf32, #tpu.memory_space<vmem>>, vector<2x128xf32>
    tpu.vector_store %arg9[%c0_8, %c0_9], %22 {strides = array<i32>} : memref<2x128xf32, #tpu.memory_space<vmem>>, vector<2x128xf32>,
    %c0_10 = arith.constant 0 : index
    %c0_11 = arith.constant 0 : index
    %24 = vector.load %arg3[%c0_10, %c0_11] : memref<2x128xf32, #tpu.memory_space<vmem>>, vector<2x128xf32>
    %c0_12 = arith.constant 0 : index
    %c0_13 = arith.constant 0 : index
    %25 = vector.load %arg4[%c0_12, %c0_13] : memref<2x128xf32, #tpu.memory_space<vmem>>, vector<2x128xf32>
    %26 = arith.subf %24, %25 : vector<2x128xf32>
    %27 = math.absf %26 : vector<2x128xf32>
    %cst_14 = arith.constant 1.000000e+00 : f32
    %28 = vector.broadcast %cst_14 : f32 to vector<2x128xf32>
    %29 = arith.cmpf olt, %27, %28 : vector<2x128xf32>
    %cst_15 = arith.constant 5.000000e-01 : f32
    %30 = vector.broadcast %cst_15 : f32 to vector<2x128xf32>
    %31 = arith.mulf %30, %26 : vector<2x128xf32>
    %32 = arith.mulf %31, %26 : vector<2x128xf32>
    %cst_16 = arith.constant 5.000000e-01 : f32
    %33 = vector.broadcast %cst_16 : f32 to vector<2x128xf32>
    %34 = arith.subf %27, %33 : vector<2x128xf32>
    %35 = arith.select %29, %32, %34 : vector<2x128xi1>, vector<2x128xf32>
    %c0_17 = arith.constant 0 : index
    %c0_18 = arith.constant 0 : index
    %36 = vector.load %arg10[%c0_17, %c0_18] : memref<2x128xf32, #tpu.memory_space<vmem>>, vector<2x128xf32>
    %37 = arith.mulf %35, %11 : vector<2x128xf32>
    %38 = arith.addf %36, %37 : vector<2x128xf32>
    %c0_19 = arith.constant 0 : index
    %c0_20 = arith.constant 0 : index
    %39 = vector.load %arg10[%c0_19, %c0_20] : memref<2x128xf32, #tpu.memory_space<vmem>>, vector<2x128xf32>
    tpu.vector_store %arg10[%c0_19, %c0_20], %38 {strides = array<i32>} : memref<2x128xf32, #tpu.memory_space<vmem>>, vector<2x128xf32>,
    %c0_21 = arith.constant 0 : index
    %c0_22 = arith.constant 0 : index
    %40 = vector.load %arg5[%c0_21, %c0_22] : memref<2x128xf32, #tpu.memory_space<vmem>>, vector<2x128xf32>
    %c0_23 = arith.constant 0 : index
    %c0_24 = arith.constant 0 : index
    %41 = vector.load %arg6[%c0_23, %c0_24] : memref<2x128xf32, #tpu.memory_space<vmem>>, vector<2x128xf32>
    %42 = arith.subf %40, %41 : vector<2x128xf32>
    %43 = math.absf %42 : vector<2x128xf32>
    %cst_25 = arith.constant 1.000000e+00 : f32
    %44 = vector.broadcast %cst_25 : f32 to vector<2x128xf32>
    %45 = arith.cmpf olt, %43, %44 : vector<2x128xf32>
    %cst_26 = arith.constant 5.000000e-01 : f32
    %46 = vector.broadcast %cst_26 : f32 to vector<2x128xf32>
    %47 = arith.mulf %46, %42 : vector<2x128xf32>
    %48 = arith.mulf %47, %42 : vector<2x128xf32>
    %cst_27 = arith.constant 5.000000e-01 : f32
    %49 = vector.broadcast %cst_27 : f32 to vector<2x128xf32>
    %50 = arith.subf %43, %49 : vector<2x128xf32>
    %51 = arith.select %45, %48, %50 : vector<2x128xi1>, vector<2x128xf32>
    %c0_28 = arith.constant 0 : index
    %c0_29 = arith.constant 0 : index
    %52 = vector.load %arg11[%c0_28, %c0_29] : memref<2x128xf32, #tpu.memory_space<vmem>>, vector<2x128xf32>
    %53 = arith.mulf %51, %11 : vector<2x128xf32>
    %54 = arith.addf %52, %53 : vector<2x128xf32>
    %c0_30 = arith.constant 0 : index
    %c0_31 = arith.constant 0 : index
    %55 = vector.load %arg11[%c0_30, %c0_31] : memref<2x128xf32, #tpu.memory_space<vmem>>, vector<2x128xf32>
    tpu.vector_store %arg11[%c0_30, %c0_31], %54 {strides = array<i32>} : memref<2x128xf32, #tpu.memory_space<vmem>>, vector<2x128xf32>,
    %c0_i32_32 = arith.constant 0 : i32
    %56 = arith.cmpi eq, %arg0, %c0_i32_32 : i32
    %57 = arith.extui %56 : i1 to i32
    %c0_i32_33 = arith.constant 0 : i32
    %58 = arith.cmpi ne, %57, %c0_i32_33 : i32
    scf.if %58 {
      %c0_34 = arith.constant 0 : index
      %c0_35 = arith.constant 0 : index
      %59 = vector.load %arg7[%c0_34, %c0_35] : memref<2x1xi32, #tpu.memory_space<vmem>>, vector<2x1xi32>
      %60 = vector.shape_cast %59 : vector<2x1xi32> to vector<1x2x1xi32>
      %cst_36 = arith.constant dense<0> : vector<1xi32>
      %61 = vector.multi_reduction <add>, %60, %cst_36 [1, 2] : vector<1x2x1xi32> to vector<1xi32>
      %62 = vector.shape_cast %61 : vector<1xi32> to vector<1x1x1xi32>
      %63 = vector.extract %62[0, 0, 0] : i32 from vector<1x1x1xi32>
      %64 = arith.sitofp %63 : i32 to f32
      %cst_37 = arith.constant 1.000000e+00 : f32
      %65 = arith.divf %cst_37, %64 : f32
      %c0_38 = arith.constant 0 : index
      %c0_39 = arith.constant 0 : index
      %66 = vector.load %arg9[%c0_38, %c0_39] : memref<2x128xf32, #tpu.memory_space<vmem>>, vector<2x128xf32>
      %67 = vector.shape_cast %66 : vector<2x128xf32> to vector<1x2x128xf32>
      %cst_40 = arith.constant dense<0.000000e+00> : vector<1xf32>
      %68 = vector.multi_reduction <add>, %67, %cst_40 [1, 2] : vector<1x2x128xf32> to vector<1xf32>
      %69 = vector.shape_cast %68 : vector<1xf32> to vector<1x1x1xf32>
      %70 = vector.extract %69[0, 0, 0] : f32 from vector<1x1x1xf32>
      %71 = arith.mulf %70, %65 : f32
      %c0_41 = arith.constant 0 : index
      %72 = memref.load %arg8[%c0_41] : memref<3xf32, #tpu.memory_space<smem>>
      memref.store %71, %arg8[%c0_41] : memref<3xf32, #tpu.memory_space<smem>>
      %c0_42 = arith.constant 0 : index
      %c0_43 = arith.constant 0 : index
      %73 = vector.load %arg10[%c0_42, %c0_43] : memref<2x128xf32, #tpu.memory_space<vmem>>, vector<2x128xf32>
      %74 = vector.shape_cast %73 : vector<2x128xf32> to vector<1x2x128xf32>
      %cst_44 = arith.constant dense<0.000000e+00> : vector<1xf32>
      %75 = vector.multi_reduction <add>, %74, %cst_44 [1, 2] : vector<1x2x128xf32> to vector<1xf32>
      %76 = vector.shape_cast %75 : vector<1xf32> to vector<1x1x1xf32>
      %77 = vector.extract %76[0, 0, 0] : f32 from vector<1x1x1xf32>
      %78 = arith.mulf %77, %65 : f32
      %c1 = arith.constant 1 : index
      %79 = memref.load %arg8[%c1] : memref<3xf32, #tpu.memory_space<smem>>
      memref.store %78, %arg8[%c1] : memref<3xf32, #tpu.memory_space<smem>>
      %c0_45 = arith.constant 0 : index
      %c0_46 = arith.constant 0 : index
      %80 = vector.load %arg11[%c0_45, %c0_46] : memref<2x128xf32, #tpu.memory_space<vmem>>, vector<2x128xf32>
      %81 = vector.shape_cast %80 : vector<2x128xf32> to vector<1x2x128xf32>
      %cst_47 = arith.constant dense<0.000000e+00> : vector<1xf32>
      %82 = vector.multi_reduction <add>, %81, %cst_47 [1, 2] : vector<1x2x128xf32> to vector<1xf32>
      %83 = vector.shape_cast %82 : vector<1xf32> to vector<1x1x1xf32>
      %84 = vector.extract %83[0, 0, 0] : f32 from vector<1x1x1xf32>
      %85 = arith.mulf %84, %65 : f32
      %c2 = arith.constant 2 : index
      %86 = memref.load %arg8[%c2] : memref<3xf32, #tpu.memory_space<smem>>
      memref.store %85, %arg8[%c2] : memref<3xf32, #tpu.memory_space<smem>>
    } else {
    }
    return
  }
  func.func @transform_0(%arg0: i32) -> (i32, i32) {
    %c0_i32 = arith.constant 0 : i32
    %c0_i32_0 = arith.constant 0 : i32
    return %c0_i32, %arg0 : i32, i32
  }
  func.func @transform_1(%arg0: i32) -> (i32, i32) {
    %c0_i32 = arith.constant 0 : i32
    %c0_i32_0 = arith.constant 0 : i32
    return %c0_i32, %arg0 : i32, i32
  }
  func.func @transform_2(%arg0: i32) -> (i32, i32) {
    %c0_i32 = arith.constant 0 : i32
    %c0_i32_0 = arith.constant 0 : i32
    return %c0_i32, %arg0 : i32, i32
  }
  func.func @transform_3(%arg0: i32) -> (i32, i32) {
    %c0_i32 = arith.constant 0 : i32
    %c0_i32_0 = arith.constant 0 : i32
    return %c0_i32, %arg0 : i32, i32
  }
  func.func @transform_4(%arg0: i32) -> (i32, i32) {
    %c0_i32 = arith.constant 0 : i32
    %c0_i32_0 = arith.constant 0 : i32
    return %c0_i32, %arg0 : i32, i32
  }
  func.func @transform_5(%arg0: i32) -> (i32, i32) {
    %c0_i32 = arith.constant 0 : i32
    %c0_i32_0 = arith.constant 0 : i32
    return %c0_i32, %arg0 : i32, i32
  }
  func.func @transform_6(%arg0: i32) -> (i32, i32) {
    %c0_i32 = arith.constant 0 : i32
    %c0_i32_0 = arith.constant 0 : i32
    %c0_i32_1 = arith.constant 0 : i32
    return %c0_i32, %c0_i32_0 : i32, i32
  }
  func.func @transform_7(%arg0: i32) -> i32 {
    %c0_i32 = arith.constant 0 : i32
    %c0_i32_0 = arith.constant 0 : i32
    return %c0_i32 : i32
  }
}

</mosaic_0001>

<bundles_post_ra>
// kernel: tpu_custom_call.1
= control target key start
LH: loop header
LB: loop body
LE: loop exit
PB: predicated region body
PF: predicated region fallthrough
CT: control target
= control target key end

     0   :  { %vm88_vm0 = vcmask 1024   ;;  %v200_v2 = vmov 0   ;;  %v201_v5 = vmov 0.0   ;;  %s270_s0 = inlined_call_operand.vmem [shape: f32[2,128], index: 0, kind: input, shape index: {}]   ;;  %s271_s1 = inlined_call_operand.vmem [shape: s32[2,128], index: 1, kind: input, shape index: {}]   ;;  %s272_s2 = inlined_call_operand.vmem [shape: f32[2,128], index: 2, kind: input, shape index: {}]   ;;  %s273_s3 = inlined_call_operand.vmem [shape: f32[2,128], index: 3, kind: input, shape index: {}]   ;;  %s274_s4 = inlined_call_operand.vmem [shape: f32[2,128], index: 4, kind: input, shape index: {}]   ;;  %s275_s5 = inlined_call_operand.vmem [shape: f32[2,128], index: 5, kind: input, shape index: {}]   ;;  %s276_s6 = inlined_call_operand.vmem [shape: s32[2,1], index: 6, kind: input, shape index: {}]   ;;  %s277_s7 = inlined_call_operand.hbm [shape: f32[3], index: 7, kind: output, shape index: {}]  }
   0x1   :  { %v39_v0 = vld [vmem:[%s276_s6] sm:$0x3]  ;;  %185 = vset.pattern.permute.xlu0 %v200_v2  ;;  %31 = vst [vmem:[#allocation2] sm:$0x3] %v201_v5  ;;  %32 = vst [vmem:[#allocation3] sm:$0x3] %v201_v5 }
   0x2   :  { %v87_v1 = vld [vmem:[%s276_s6] sm:$0x3]  ;;  %41 = vperm.xlu0 %185, %v39_v0   ;;  %33 = vst [vmem:[#allocation4] sm:$0x3] %v201_v5 }
   0x3   :  { %v89_v3 = vsel %vm88_vm0, %v87_v1, 0 }
   0x4   :  { %v90_v4 = vand.u32 65535, %v89_v3 }
   0x6   :  { %v92_v6 = vcvt.s32.f32 %v90_v4 }
   0x7   :  { %12 = vsyncpa [#allocation6], 0  ;;  %v91_v7 = vshrl.u32 %v89_v3, 16  ;;  %v46_v9 = vld [vmem:[%s271_s1] sm:$0x3]  ;;  %v34_v25 = vlaneseq  ;;  %vm114_vm4 = vcmask 1041408  }
   0x8   :  { %94 = vadd.xlane.f32.xlu1 %v92_v6  ;;  %v47_v10 = vcvt.s32.f32 %v46_v9  ;;  %v58_v12 = vld [vmem:[%s272_s2] sm:$0x3]  ;;  %v67_v38 = vld [vmem:[#allocation3] sm:$0x3]  ;;  %s202_s19 = smov [#allocation5]  }
   0x9   :  { %v93_v8 = vcvt.s32.f32 %v91_v7  ;;  %v59_v13 = vld [vmem:[%s273_s3] sm:$0x3]  ;;  %v35_v31 = vand.u32 127, %v34_v25  ;;  %v80_v39 = vld [vmem:[#allocation4] sm:$0x3] }
   0xa   :  { %v48_v11 = vadd.f32 1e-08, %v47_v10  ;;  %v71_v14 = vld [vmem:[%s274_s4] sm:$0x3]  ;;  %v60_v17 = vsub.f32 %v58_v12, %v59_v13 }
   0xb   :  { %v72_v15 = vld [vmem:[%s275_s5] sm:$0x3] }
   0xc   :  { %186 = vlog2.f32 %v48_v11  ;;  %v73_v18 = vsub.f32 %v71_v14, %v72_v15  ;;  %v51_v20 = vld [vmem:[%s270_s0] sm:$0x3]  ;;  %v61_v21 = vand.u32 2147483647, %v60_v17  ;;  %v63_v22 = vmul.f32 0.5, %v60_v17 }
   0xd   :  { %v53_v36 = vld [vmem:[#allocation2] sm:$0x3] }
   0xe   :  { %v74_v23 = vand.u32 2147483647, %v73_v18  ;;  %v76_v24 = vmul.f32 0.5, %v73_v18  ;;  %v64_v27 = vmul.f32 %v63_v22, %v60_v17  ;;  %v170_v28 = vadd.f32 -0.5, %v61_v21 }
   0xf   :  { %vm62_vm1 = vcmp.lt.f32.partialorder %v61_v21, 1.0 }
  0x10   :  { %v77_v29 = vmul.f32 %v76_v24, %v73_v18  ;;  %v171_v30 = vadd.f32 -0.5, %v74_v23  ;;  %vm75_vm2 = vcmp.lt.f32.partialorder %v74_v23, 1.0  ;;  %v66_v33 = vsel %vm62_vm1, %v64_v27, %v170_v28 }
  0x12   :  { %v79_v34 = vsel %vm75_vm2, %v77_v29, %v171_v30 }
  0x19   :  { %v187_v16 = vpop.eup %186 }
  0x1a   :  { %v50_v19 = vmul.f32 0.6931472, %v187_v16 }
  0x1c   :  { %v52_v26 = vsub.f32 %v51_v20, %v50_v19 }
  0x1e   :  { %v54_v32 = vmul.f32 %v52_v26, %v52_v26 }
  0x21   :  { %96 = vadd.xlane.f32.xlu0 %v93_v8 }
  0x7d   :  { %v42_v35 = vpop.permute.xlu0 %41 }
  0x7e   :  { %vm43_vm3 = vcmp.lt.s32.totalorder %v35_v31, %v42_v35 }
  0x7f   :  { %v169_v37 = vsel %vm43_vm3, 1.0, %v201_v5 }
  0x80   :  { %v55_v40 = vmul.f32 %v169_v37, %v54_v32  ;;  %v68_v41 = vmul.f32 %v169_v37, %v66_v33  ;;  %v81_v42 = vmul.f32 %v169_v37, %v79_v34 }
  0x82   :  { %v56_v43 = vadd.f32 %v55_v40, %v53_v36  ;;  %v69_v44 = vadd.f32 %v68_v41, %v67_v38  ;;  %v82_v45 = vadd.f32 %v81_v42, %v80_v39 }
  0x84   :  { %57 = vst [vmem:[#allocation2] sm:$0x3] %v56_v43  ;;  %70 = vst [vmem:[#allocation3] sm:$0x3] %v69_v44 }
  0x85   :  { %83 = vst [vmem:[#allocation4] sm:$0x3] %v82_v45 }
  0x8b   :  { %v113_v46 = vld [vmem:[#allocation2] sm:$0x3]  ;;  %v128_v48 = vld [vmem:[#allocation3] sm:$0x3] }
  0x8c   :  { %v115_v47 = vsel %vm114_vm4, %v113_v46, 0.0  ;;  %v129_v49 = vsel %vm114_vm4, %v128_v48, 0.0  ;;  %v142_v50 = vld [vmem:[#allocation4] sm:$0x3] }
  0x8d   :  { %116 = vadd.xlane.f32.xlu1 %v115_v47  ;;  %v143_v51 = vsel %vm114_vm4, %v142_v50, 0.0 }
  0x91   :  { %130 = vadd.xlane.f32.xlu1 %v129_v49  ;;  %v95_v52 = vpop.xlane.xlu1 %94 }
  0x92   :  { %v98_v55 = vcvt.f32.s32 %v95_v52 }
  0x95   :  { %144 = vadd.xlane.f32.xlu1 %v143_v51 }
  0xaa   :  { %v97_v53 = vpop.xlane.xlu0 %96 }
  0xab   :  { %v99_v54 = vcvt.f32.s32 %v97_v53 }
  0xad   :  { %v100_v56 = vshll.u32 %v99_v54, 16 }
  0xaf   :  { %v101_v57 = vadd.s32 %v100_v56, %v98_v55 }
  0xb1   :  { %v102_v58 = vrot.slane %v101_v57, 4 }
  0xb3   :  { %v103_v59 = vadd.s32 %v102_v58, %v101_v57 }
  0xb5   :  { %v104_v60 = vrot.slane %v103_v59, 2 }
  0xb7   :  { %v105_v61 = vadd.s32 %v104_v60, %v103_v59 }
  0xb9   :  { %v106_v62 = vrot.slane %v105_v61, 1 }
  0xbb   :  { %v107_v63 = vadd.s32 %v106_v62, %v105_v61 }
  0xbd   :  { %172 = vpush %v107_v63 }
  0xee   :  { %s173_s0 = spop %172 }
  0xef   :  { %s109_s2 = scvt.s32.f32 %s173_s0 }
  0xf1   :  { %v110_v0 = vstv %s109_s2 }
  0xf2   :  { %188 = vrcp.f32 %v110_v0 }
  0xff   :  { %v189_v1 = vpop.eup %188 }
 0x100   :  { %174 = vpush %v189_v1 }
 0x116   :  { %v117_v2 = vpop.xlane.xlu1 %116 }
 0x117   :  { %v118_v3 = vrot.slane %v117_v2, 4 }
 0x119   :  { %v119_v4 = vadd.f32 %v118_v3, %v117_v2 }
 0x11a   :  { %v131_v5 = vpop.xlane.xlu1 %130 }
 0x11b   :  { %v120_v6 = vrot.slane %v119_v4, 2  ;;  %v132_v7 = vrot.slane %v131_v5, 4 }
 0x11d   :  { %v133_v8 = vadd.f32 %v132_v7, %v131_v5  ;;  %v121_v9 = vadd.f32 %v120_v6, %v119_v4 }
 0x11e   :  { %v145_v10 = vpop.xlane.xlu1 %144 }
 0x11f   :  { %v134_v11 = vrot.slane %v133_v8, 2  ;;  %v146_v12 = vrot.slane %v145_v10, 4  ;;  %v122_v13 = vrot.slane %v121_v9, 1 }
 0x121   :  { %v147_v14 = vadd.f32 %v146_v12, %v145_v10  ;;  %v123_v15 = vadd.f32 %v122_v13, %v121_v9  ;;  %v135_v16 = vadd.f32 %v134_v11, %v133_v8 }
 0x123   :  { %v148_v17 = vrot.slane %v147_v14, 2  ;;  %176 = vpush %v123_v15  ;;  %v136_v18 = vrot.slane %v135_v16, 1 }
 0x125   :  { %v149_v19 = vadd.f32 %v148_v17, %v147_v14  ;;  %v137_v20 = vadd.f32 %v136_v18, %v135_v16 }
 0x127   :  { %178 = vpush %v137_v20  ;;  %v150_v21 = vrot.slane %v149_v19, 1 }
 0x129   :  { %v151_v22 = vadd.f32 %v150_v21, %v149_v19 }
 0x12b   :  { %180 = vpush %v151_v22 }
 0x131   :  { %s175_s3 = spop %174 }
 0x154   :  { %s177_s4 = spop %176 }
 0x155   :  { %s125_s5 = smul.f32 %s177_s4, %s175_s3 }
 0x157   :  { %127 = sst [smem:[#allocation5]] %s125_s5 }
 0x158   :  { %s179_s15 = spop %178 }
 0x159   :  { %s139_s16 = smul.f32 %s179_s15, %s175_s3 }
 0x15b   :  { %141 = sst [smem:[#allocation5 + $0x1]] %s139_s16 }
 0x15c   :  { %s181_s17 = spop %180 }
 0x15d   :  { %s153_s18 = smul.f32 %s181_s17, %s175_s3 }
 0x15f   :  { %155 = sst [smem:[#allocation5 + $0x2]] %s153_s18 }
 0x160   :  { %163 = dma.smem_to_hbm %s202_s19, 16, %s277_s7, [#allocation6]  }
 0x161   :  { %198 = dma.done.wait [#allocation6], 16  }
 0x162   :  { %199 = vsyncadd [#allocation6], 4294967280 }
 0x163   :  { %167 = sfence }
 0x164   :  { %168 = vsyncpa [#allocation6], 1 }

</bundles_post_ra>
